<compile_context>
chip_gen: v7x
topology: tpu7x:2x2x1
jax: 0.10.0
libtpu: 0.0.40
codegen_flags: <defaults>
</compile_context>

<pallas_src>
import jax
import jax.numpy as jnp
from jax.experimental import pallas as pl
from jax.experimental.pallas import tpu as pltpu

IN_FEATURES = 784
HIDDEN = 256
OUT_FEATURES = 10

# Lane-dense padded output width (10 -> one full 128-lane tile, unmasked stores).
N_PAD = 128

# Per-step row target: large enough to amortize per-grid-step overhead,
# small enough to stay under the 32 MiB scoped-VMEM default everywhere
# (double-buffered f32 x tile @ 2048 rows is ~14 MiB incl. lane padding).
_TM_TARGET = 2048


def _round_up(x, m):
    return (x + m - 1) // m * m


def _choose_tm(batch):
    """Pick the batch tile (multiple of 8) for the 1-D batch grid."""
    batch8 = _round_up(batch, 8)
    if batch8 <= 16:
        return batch8  # tiny batch: single tile
    if batch8 <= 2 * _TM_TARGET:
        # At least 2 grid steps so both v7x TensorCores get work
        # ("parallel" axis); trailing-tile waste is <= 7 rows.
        return _round_up((batch8 + 1) // 2, 8)
    # Large batch: tm = ceil(batch/steps) keeps the trailing tile nearly full
    # (avoids up to tm-1 dead rows from a blind round_up(batch, tm)).
    steps = -(-batch8 // _TM_TARGET)
    return _round_up(-(-batch8 // steps), 8)


def mlp_kernel(x_ref, w1_ref, b1_ref, w2_ref, b2_ref, o_ref):
    # Cast activations to bf16 at the MXU boundary (x streamed as f32 from HBM).
    x = x_ref[...].astype(jnp.bfloat16)
    # hidden = x @ W1  -- bf16 MXU inputs, f32 accumulation.
    h = jnp.dot(x, w1_ref[...], preferred_element_type=jnp.float32)
    # bias + ReLU in f32 on the VPU.
    a = jnp.maximum(h + b1_ref[...], 0.0)
    # out = relu(.) @ W2 + b2.  (Keep `a` in f32 here instead if tighter
    # parity with an all-f32 PyTorch MLP is ever needed; not the bottleneck.)
    o = jnp.dot(a.astype(jnp.bfloat16), w2_ref[...],
                preferred_element_type=jnp.float32)
    o_ref[...] = (o + b2_ref[...]).astype(o_ref.dtype)


def prepare_params(w1, b1, w2, b2):
    """One-time conversion of [in, out]-layout f32 params to kernel layout.

    Call once and reuse the result; keeps the pad/cast out of the per-call path.
    w1: (784, 256), b1: (256,), w2: (256, 10), b2: (10,)  -- weights stored
    pre-transposed ([in, out]) so the kernel computes y = x @ W + b directly
    (matches PyTorch nn.Linear semantics).
    """
    w1_p = w1.astype(jnp.bfloat16)                                   # (784, 256)
    b1_p = b1.reshape(1, HIDDEN).astype(jnp.float32)                 # (1, 256)
    w2_p = jnp.zeros((HIDDEN, N_PAD), jnp.bfloat16)
    w2_p = w2_p.at[:, :OUT_FEATURES].set(w2.astype(jnp.bfloat16))    # (256, 128)
    b2_p = jnp.zeros((1, N_PAD), jnp.float32)
    b2_p = b2_p.at[:, :OUT_FEATURES].set(b2.astype(jnp.float32))     # (1, 128)
    return w1_p, b1_p, w2_p, b2_p


@jax.jit
def mlp_forward(x, w1_p, b1_p, w2_p, b2_p):
    """y = relu(x @ w1 + b1) @ w2 + b2, with params from prepare_params()."""
    batch = x.shape[0]
    tm = _choose_tm(batch)
    grid = (pl.cdiv(batch, tm),)

    vmem = pltpu.MemorySpace.VMEM
    # Weights/biases have constant index_maps: DMA'd once, VMEM-resident,
    # single-buffered (no point double-buffering a block that never changes).
    resident = dict(memory_space=vmem, pipeline_mode=pl.Buffered(1))

    out_p = pl.pallas_call(
        mlp_kernel,
        out_shape=jax.ShapeDtypeStruct((batch, N_PAD), jnp.bfloat16),
        grid=grid,
        in_specs=[
            # activations: f32, read once, tiled over the batch grid axis;
            # last dim = full 784 (Mosaic pads K lanes internally in VMEM).
            pl.BlockSpec((tm, IN_FEATURES), lambda i: (i, 0), memory_space=vmem),
            pl.BlockSpec((IN_FEATURES, HIDDEN), lambda i: (0, 0), **resident),
            pl.BlockSpec((1, HIDDEN), lambda i: (0, 0), **resident),
            pl.BlockSpec((HIDDEN, N_PAD), lambda i: (0, 0), **resident),
            pl.BlockSpec((1, N_PAD), lambda i: (0, 0), **resident),
        ],
        out_specs=pl.BlockSpec((tm, N_PAD), lambda i: (i, 0), memory_space=vmem),
        compiler_params=pltpu.CompilerParams(
            dimension_semantics=("parallel",),
        ),
    )(x, w1_p, b1_p, w2_p, b2_p)

    # Slice the lane-dense padded output back to the logical shape; the final
    # (batch, 10) f32 cast is negligible and matches the PyTorch output dtype.
    return out_p[:, :OUT_FEATURES].astype(jnp.float32)


def mlp_reference(x, w1, b1, w2, b2):
    h = x @ w1 + b1
    a = jnp.maximum(h, 0.0)
    return a @ w2 + b2


if __name__ == "__main__":
    key = jax.random.PRNGKey(0)
    k_x, k1, k2, k3, k4 = jax.random.split(key, 5)

    # X ~ Normal(0, 0.01), shape (2, 784) -- matches the PyTorch script.
    x = 0.01 * jax.random.normal(k_x, (2, IN_FEATURES), dtype=jnp.float32)

    # nn.Linear-style init (uniform +/- 1/sqrt(fan_in)), weights pre-transposed.
    bound1 = 1.0 / jnp.sqrt(IN_FEATURES)
    bound2 = 1.0 / jnp.sqrt(HIDDEN)
    w1 = jax.random.uniform(k1, (IN_FEATURES, HIDDEN), jnp.float32, -bound1, bound1)
    b1 = jax.random.uniform(k2, (HIDDEN,), jnp.float32, -bound1, bound1)
    w2 = jax.random.uniform(k3, (HIDDEN, OUT_FEATURES), jnp.float32, -bound2, bound2)
    b2 = jax.random.uniform(k4, (OUT_FEATURES,), jnp.float32, -bound2, bound2)

    # One-time parameter layout/dtype conversion, outside the hot path.
    params = prepare_params(w1, b1, w2, b2)

    out = jax.block_until_ready(mlp_forward(x, *params))
    assert out.shape == (2, OUT_FEATURES)
    assert out.dtype == jnp.float32

    # Tight check: reference computed on the same bf16-quantized operands and
    # with the same bf16 output rounding as the kernel.
    xq = x.astype(jnp.bfloat16).astype(jnp.float32)
    w1q = w1.astype(jnp.bfloat16).astype(jnp.float32)
    w2q = w2.astype(jnp.bfloat16).astype(jnp.float32)
    hq = jnp.maximum(xq @ w1q + b1, 0.0).astype(jnp.bfloat16).astype(jnp.float32)
    ref_q = (hq @ w2q + b2).astype(jnp.bfloat16).astype(jnp.float32)
    assert jnp.allclose(out, ref_q, atol=2e-3, rtol=2e-2), (
        f"max abs err vs bf16 ref: {jnp.max(jnp.abs(out - ref_q)):.3e}")

    # Loose sanity check against the full-f32 reference (bf16 rounding error).
    ref_f32 = mlp_reference(x, w1, b1, w2, b2)
    assert jnp.allclose(out, ref_f32, atol=5e-3, rtol=5e-2), (
        f"max abs err vs f32 ref: {jnp.max(jnp.abs(out - ref_f32)):.3e}")

    print("KERNEL_OK")
</pallas_src>

<mosaic_0001>
module attributes {stable_mosaic.version = 11 : i64} {
  func.func @mlp_kernel(%arg0: i32, %arg1: memref<8x784xf32, #tpu.memory_space<vmem>>, %arg2: memref<784x256xbf16, #tpu.memory_space<vmem>>, %arg3: memref<1x256xf32, #tpu.memory_space<vmem>>, %arg4: memref<256x128xbf16, #tpu.memory_space<vmem>>, %arg5: memref<1x128xf32, #tpu.memory_space<vmem>>, %arg6: memref<8x128xbf16, #tpu.memory_space<vmem>>) attributes {dimension_semantics = [#tpu.dimension_semantics<parallel>], iteration_bounds = array<i64: 1>, scalar_prefetch = 0 : i64, scratch_operands = 0 : i64, tpu.core_type = #tpu.core_type<tc>, window_params = [{transform_indices = @transform_0, window_bounds = array<i64: 8, 784>}, {pipeline_mode = #tpu.pipeline_mode<synchronous>, transform_indices = @transform_1, window_bounds = array<i64: 784, 256>}, {pipeline_mode = #tpu.pipeline_mode<synchronous>, transform_indices = @transform_2, window_bounds = array<i64: 1, 256>}, {pipeline_mode = #tpu.pipeline_mode<synchronous>, transform_indices = @transform_3, window_bounds = array<i64: 256, 128>}, {pipeline_mode = #tpu.pipeline_mode<synchronous>, transform_indices = @transform_4, window_bounds = array<i64: 1, 128>}, {transform_indices = @transform_5, window_bounds = array<i64: 8, 128>}]} {
    %c0 = arith.constant 0 : index
    %c0_0 = arith.constant 0 : index
    %0 = vector.load %arg1[%c0, %c0_0] : memref<8x784xf32, #tpu.memory_space<vmem>>, vector<8x784xf32>
    %1 = arith.truncf %0 : vector<8x784xf32> to vector<8x784xbf16>
    %c0_1 = arith.constant 0 : index
    %c0_2 = arith.constant 0 : index
    %2 = vector.load %arg2[%c0_1, %c0_2] : memref<784x256xbf16, #tpu.memory_space<vmem>>, vector<784x256xbf16>
    %cst = arith.constant dense<0.000000e+00> : vector<8x256xf32>
    %3 = tpu.matmul %1, %2, %cst {dimension_numbers = #tpu.dot_dimension_numbers<[1], [0], [0], [1], [0, 0, 1, 1], [], []>} : vector<8x784xbf16>, vector<784x256xbf16>, vector<8x256xf32> -> vector<8x256xf32>
    %c0_3 = arith.constant 0 : index
    %c0_4 = arith.constant 0 : index
    %4 = vector.load %arg3[%c0_3, %c0_4] : memref<1x256xf32, #tpu.memory_space<vmem>>, vector<1x256xf32>
    %5 = vector.broadcast %4 : vector<1x256xf32> to vector<8x256xf32>
    %6 = arith.addf %3, %5 : vector<8x256xf32>
    %cst_5 = arith.constant 0.000000e+00 : f32
    %7 = vector.broadcast %cst_5 : f32 to vector<8x256xf32>
    %8 = arith.maximumf %6, %7 : vector<8x256xf32>
    %9 = arith.truncf %8 : vector<8x256xf32> to vector<8x256xbf16>
    %c0_6 = arith.constant 0 : index
    %c0_7 = arith.constant 0 : index
    %10 = vector.load %arg4[%c0_6, %c0_7] : memref<256x128xbf16, #tpu.memory_space<vmem>>, vector<256x128xbf16>
    %cst_8 = arith.constant dense<0.000000e+00> : vector<8x128xf32>
    %11 = tpu.matmul %9, %10, %cst_8 {dimension_numbers = #tpu.dot_dimension_numbers<[1], [0], [0], [1], [0, 0, 1, 1], [], []>} : vector<8x256xbf16>, vector<256x128xbf16>, vector<8x128xf32> -> vector<8x128xf32>
    %c0_9 = arith.constant 0 : index
    %c0_10 = arith.constant 0 : index
    %12 = vector.load %arg5[%c0_9, %c0_10] : memref<1x128xf32, #tpu.memory_space<vmem>>, vector<1x128xf32>
    %13 = vector.broadcast %12 : vector<1x128xf32> to vector<8x128xf32>
    %14 = arith.addf %11, %13 : vector<8x128xf32>
    %15 = arith.truncf %14 : vector<8x128xf32> to vector<8x128xbf16>
    %c0_11 = arith.constant 0 : index
    %c0_12 = arith.constant 0 : index
    %16 = vector.load %arg6[%c0_11, %c0_12] : memref<8x128xbf16, #tpu.memory_space<vmem>>, vector<8x128xbf16>
    tpu.vector_store %arg6[%c0_11, %c0_12], %15 {strides = array<i32>} : memref<8x128xbf16, #tpu.memory_space<vmem>>, vector<8x128xbf16>,
    return
  }
  func.func @transform_0(%arg0: i32) -> (i32, i32) {
    %c0_i32 = arith.constant 0 : i32
    %c0_i32_0 = arith.constant 0 : i32
    return %arg0, %c0_i32 : i32, i32
  }
  func.func @transform_1(%arg0: i32) -> (i32, i32) {
    %c0_i32 = arith.constant 0 : i32
    %c0_i32_0 = arith.constant 0 : i32
    %c0_i32_1 = arith.constant 0 : i32
    return %c0_i32, %c0_i32_0 : i32, i32
  }
  func.func @transform_2(%arg0: i32) -> (i32, i32) {
    %c0_i32 = arith.constant 0 : i32
    %c0_i32_0 = arith.constant 0 : i32
    %c0_i32_1 = arith.constant 0 : i32
    return %c0_i32, %c0_i32_0 : i32, i32
  }
  func.func @transform_3(%arg0: i32) -> (i32, i32) {
    %c0_i32 = arith.constant 0 : i32
    %c0_i32_0 = arith.constant 0 : i32
    %c0_i32_1 = arith.constant 0 : i32
    return %c0_i32, %c0_i32_0 : i32, i32
  }
  func.func @transform_4(%arg0: i32) -> (i32, i32) {
    %c0_i32 = arith.constant 0 : i32
    %c0_i32_0 = arith.constant 0 : i32
    %c0_i32_1 = arith.constant 0 : i32
    return %c0_i32, %c0_i32_0 : i32, i32
  }
  func.func @transform_5(%arg0: i32) -> (i32, i32) {
    %c0_i32 = arith.constant 0 : i32
    %c0_i32_0 = arith.constant 0 : i32
    return %arg0, %c0_i32 : i32, i32
  }
}

</mosaic_0001>

<bundles_post_ra>
// kernel: mlp_forward.1
= control target key start
LH: loop header
LB: loop body
LE: loop exit
PB: predicated region body
PF: predicated region fallthrough
CT: control target
= control target key end

     0   :  { %10 = vsyncpa [#allocation3], 0  ;;  %s1707_s0 = inlined_call_operand.hbm [shape: f32[2,784], index: 0, kind: input, shape index: {}]   ;;  %s1708_s1 = inlined_call_operand.hbm [shape: bf16[784,256], index: 1, kind: input, shape index: {}]   ;;  %s1709_s2 = inlined_call_operand.vmem [shape: f32[1,256], index: 2, kind: input, shape index: {}]   ;;  %s1710_s3 = inlined_call_operand.hbm [shape: bf16[256,128], index: 3, kind: input, shape index: {}]   ;;  %s1711_s4 = inlined_call_operand.vmem [shape: f32[1,128], index: 4, kind: input, shape index: {}]   ;;  %s1712_s5 = inlined_call_operand.vmem [shape: bf16[2,128], index: 5, kind: output, shape index: {}]  }
   0x1   :  { %11 = vsyncpa [#allocation5], 0 }
   0x2   :  { %16 = vsyncadd [#allocation3], 672  ;;  %s1592_s18 = smov [#allocation4]   ;;  %s1522_s22 = scalar_lea.hbm %s1708_s1, 12544 }
   0x3   :  { %s29_s19 = sshll.u32 %s1592_s18, 4  ;;  %p1523_p0 = scmp.ne.s32.totalorder %s1708_s1, %s1522_s22  ;;  %s30_s19 = int_to_ptr.vmem [resolvable:$true] %s29_s19 }
   0x4   :  { %p1526_p1 = scmp.lt.u32.totalorder %s1522_s22, %s1708_s1 }
   0x6   :  { %p1528_p2 = pnand %p1526_p1, %p1523_p0 }
   0x8   :  { %1531 = shalt.err (!%p1528_p2)
}
   0x9   :  { %s1532_s27 = scalar_lea.vmem %s30_s19, 12544  ;;  %p1537_p4 = scmp.lt.s32.totalorder %s30_s19, %s30_s19 }
   0xa   :  { %p1533_p3 = scmp.ne.s32.totalorder %s30_s19, %s1532_s27  ;;  %p1538_p5 = scmp.lt.s32.totalorder %s1532_s27, %s1532_s27 }
   0xc   :  { %p1539_p6 = por %p1538_p5, %p1537_p4 }
   0xe   :  { %p1540_p7 = pnand %p1539_p6, %p1533_p3 }
  0x10   :  { %1543 = shalt.err (!%p1540_p7)
}
  0x11   :  { %s1593_s28 = smov 128   ;;  %s1594_s29 = smov 8  }
  0x12   :  { %35 = dma.hbm_to_vmem [thread:$0]  %s1708_s1, 12544, %s30_s19, [#allocation5], %s1593_s28, %s1593_s28, %s1594_s29  }
  0x13   :  { %s1595_s7 = smov [#allocation2]   ;;  %s1544_s11 = scalar_lea.hbm %s1707_s0, 224 }
  0x14   :  { %s17_s8 = sshll.u32 %s1595_s7, 4  ;;  %p1545_p8 = scmp.ne.s32.totalorder %s1707_s0, %s1544_s11  ;;  %s18_s8 = int_to_ptr.vmem [resolvable:$true] %s17_s8 }
  0x15   :  { %p1548_p9 = scmp.lt.u32.totalorder %s1544_s11, %s1707_s0 }
  0x17   :  { %p1550_p10 = pnand %p1548_p9, %p1545_p8 }
  0x19   :  { %1553 = shalt.err (!%p1550_p10)
}
  0x1a   :  { %s1554_s16 = scalar_lea.vmem %s18_s8, 224  ;;  %s1558_s1 = scalar_lea.vmem %s18_s8, 896 }
  0x1b   :  { %p1555_p11 = scmp.ne.s32.totalorder %s18_s8, %s1554_s16  ;;  %p1559_p12 = scmp.lt.s32.totalorder %s18_s8, %s18_s8 }
  0x1c   :  { %p1560_p13 = scmp.lt.s32.totalorder %s1558_s1, %s1554_s16 }
  0x1e   :  { %p1561_p0 = por %p1560_p13, %p1559_p12 }
  0x20   :  { %p1562_p1 = pnand %p1561_p0, %p1555_p11 }
  0x22   :  { %1565 = shalt.err (!%p1562_p1)
}
  0x23   :  { %s1596_s17 = smov 224   ;;  %s1597_s18 = smov 14  }
  0x24   :  { %23 = dma.hbm_to_vmem [thread:$0]  %s1707_s0, 224, %s18_s8, [#allocation3], %s1596_s17, %s1596_s17, %s1597_s18  }
  0x25   :  { %s1598_s21 = smov [#allocation6]   ;;  %s1566_s25 = scalar_lea.hbm %s1710_s3, 2048 }
  0x26   :  { %s43_s22 = sshll.u32 %s1598_s21, 4  ;;  %p1567_p2 = scmp.ne.s32.totalorder %s1710_s3, %s1566_s25  ;;  %s44_s22 = int_to_ptr.vmem [resolvable:$true] %s43_s22 }
  0x27   :  { %p1570_p3 = scmp.lt.u32.totalorder %s1566_s25, %s1710_s3 }
  0x29   :  { %p1572_p4 = pnand %p1570_p3, %p1567_p2 }
  0x2b   :  { %1575 = shalt.err (!%p1572_p4)
}
  0x2c   :  { %s1576_s30 = scalar_lea.vmem %s44_s22, 2048  ;;  %p1581_p6 = scmp.lt.s32.totalorder %s44_s22, %s44_s22 }
  0x2d   :  { %p1577_p5 = scmp.ne.s32.totalorder %s44_s22, %s1576_s30  ;;  %p1582_p7 = scmp.lt.s32.totalorder %s1576_s30, %s1576_s30 }
  0x2f   :  { %p1583_p8 = por %p1582_p7, %p1581_p6 }
  0x31   :  { %p1584_p9 = pnand %p1583_p8, %p1577_p5 }
  0x33   :  { %1587 = shalt.err (!%p1584_p9)
}
  0x34   :  { %s1599_s0 = smov 64   ;;  %s1600_s6 = smov 4  }
  0x35   :  { %49 = dma.hbm_to_vmem [thread:$0]  %s1710_s3, 2048, %s44_s22, [#allocation5], %s1599_s0, %s1599_s0, %s1600_s6  }
  0x36   :  { %1588 = dma.done.wait [#allocation3], 896  }
  0x37   :  { %1589 = vsyncadd [#allocation3], 4294966400 }
  0x38   :  { %1590 = dma.done.wait [#allocation5], 14592  }
  0x39   :  { %1591 = vsyncadd [#allocation5], 4294952704  ;;  %v1347_v0 = vld [vmem:[#allocation4 + $0x104] ss:$8 sps:$4 sm:$0xff]   ;;  %v1349_v1 = vld [vmem:[#allocation4 + $0x100] ss:$8 sps:$4 sm:$0xff]   ;;  %v85_v13 = vlaneseq }
  0x3a   :  { %808 = vmatprep.subr.bf16.mxu0 %v1347_v0  ;;  %v1350_v2 = vld [vmem:[#allocation4 + $0x114] ss:$8 sps:$4 sm:$0xff]   ;;  %v1352_v3 = vld [vmem:[#allocation4 + $0x110] ss:$8 sps:$4 sm:$0xff]   ;;  %v1353_v4 = vld [vmem:[#allocation4 + $0x124] ss:$8 sps:$4 sm:$0xff]  }
  0x3b   :  { %809 = vmatpush1.bf16.msra.mxu0 %v1349_v1  ;;  %v1355_v5 = vld [vmem:[#allocation4 + $0x120] ss:$8 sps:$4 sm:$0xff]   ;;  %v1356_v6 = vld [vmem:[#allocation4 + $0x134] ss:$8 sps:$4 sm:$0xff]   ;;  %v1358_v7 = vld [vmem:[#allocation4 + $0x130] ss:$8 sps:$4 sm:$0xff]  }
  0x3c   :  { %810 = vmatprep.subr.bf16.mxu0 %v1350_v2  ;;  %v1359_v8 = vld [vmem:[#allocation4 + $0x144] ss:$8 sps:$4 sm:$0xff]   ;;  %v1361_v9 = vld [vmem:[#allocation4 + $0x140] ss:$8 sps:$4 sm:$0xff]   ;;  %v1362_v10 = vld [vmem:[#allocation4 + $0x154] ss:$8 sps:$4 sm:$0xff]  }
  0x3d   :  { %v1601_v11 = vmov 1983009808   ;;  %v1364_v14 = vld [vmem:[#allocation4 + $0x150] ss:$8 sps:$4 sm:$0xff]   ;;  %v1389_v15 = vld [vmem:[#allocation4 + $0x4] ss:$8 sps:$4 sm:$0xff]  }
  0x3e   :  { %v83_v12 = vunpack.c.l.s4 %v1601_v11  ;;  %v1391_v16 = vld [vmem:[#allocation4] ss:$8 sps:$4 sm:$0xff]   ;;  %v1365_v17 = vld [vmem:[#allocation4 + $0x164] ss:$8 sps:$4 sm:$0xff]   ;;  %v1670_v19 = vshrl.u32 %v85_v13, 7  ;;  %767 = vmatprep.subr.bf16.mxu1 %v1389_v15  ;;  %vm763_vm0 = vcmask 130048  }
  0x3f   :  { %811 = vmatpush1.bf16.msra.mxu0 %v1352_v3  ;;  %768 = vmatpush1.bf16.msra.mxu1 %v1391_v16  ;;  %v1395_v20 = vld [vmem:[#allocation4 + $0x14] ss:$8 sps:$4 sm:$0xff]   ;;  %v1397_v21 = vld [vmem:[#allocation4 + $0x10] ss:$8 sps:$4 sm:$0xff]   ;;  %v1367_v22 = vld [vmem:[#allocation4 + $0x160] ss:$8 sps:$4 sm:$0xff]  }
  0x40   :  { %812 = vmatprep.subr.bf16.mxu0 %v1353_v4  ;;  %v84_v18 = vunpack.c.0.s8 %v83_v12  ;;  %v1368_v23 = vld [vmem:[#allocation4 + $0x174] ss:$8 sps:$4 sm:$0xff]   ;;  %769 = vmatprep.subr.bf16.mxu1 %v1395_v20  ;;  %v1401_v24 = vld [vmem:[#allocation4 + $0x24] ss:$8 sps:$4 sm:$0xff]   ;;  %v1370_v26 = vld [vmem:[#allocation4 + $0x170] ss:$8 sps:$4 sm:$0xff]  }
  0x41   :  { %v1403_v27 = vld [vmem:[#allocation4 + $0x20] ss:$8 sps:$4 sm:$0xff]   ;;  %v1404_v28 = vld [vmem:[#allocation2 + $0x4] ss:$14 sps:$4 sm:$0xff]  }
  0x42   :  { %v1673_v25 = vsub.s32 %v84_v18, %v1670_v19  ;;  %v1406_v29 = vld [vmem:[#allocation2 + $0x20] ss:$14 sps:$4 sm:$0xff]   ;;  %v1371_v30 = vld [vmem:[#allocation4 + $0x184] ss:$8 sps:$4 sm:$0xff]  }
  0x43   :  { %813 = vmatpush1.bf16.msra.mxu0 %v1355_v5  ;;  %770 = vmatpush1.bf16.msra.mxu1 %v1397_v21  ;;  %v1411_v33 = vld [vmem:[#allocation4 + $0x34] ss:$8 sps:$4 sm:$0xff]   ;;  %v1413_v34 = vld [vmem:[#allocation4 + $0x30] ss:$8 sps:$4 sm:$0xff]   ;;  %v1373_v35 = vld [vmem:[#allocation4 + $0x180] ss:$8 sps:$4 sm:$0xff]  }
  0x44   :  { %814 = vmatprep.subr.bf16.mxu0 %v1356_v6  ;;  %771 = vmatprep.subr.bf16.mxu1 %v1401_v24  ;;  %v1676_v31 = vrot.slane %v1404_v28, %v1673_v25  ;;  %v109_v32 = vrot.slane %v1406_v29, %v1673_v25  ;;  %v1374_v37 = vld [vmem:[#allocation4 + $0x194] ss:$8 sps:$4 sm:$0xff]   ;;  %v1417_v38 = vld [vmem:[#allocation4 + $0x44] ss:$8 sps:$4 sm:$0xff]   ;;  %v1376_v39 = vld [vmem:[#allocation4 + $0x190] ss:$8 sps:$4 sm:$0xff]  }
  0x45   :  { %v1419_v41 = vld [vmem:[#allocation4 + $0x40] ss:$8 sps:$4 sm:$0xff]   ;;  %v1423_v42 = vld [vmem:[#allocation4 + $0x54] ss:$8 sps:$4 sm:$0xff]   ;;  %v1377_v43 = vld [vmem:[#allocation4 + $0x1a4] ss:$8 sps:$4 sm:$0xff]  }
  0x46   :  { %v113_v36 = vcombine.high %v1676_v31, %v109_v32  ;;  %v1379_v44 = vld [vmem:[#allocation4 + $0x1a0] ss:$8 sps:$4 sm:$0xff]   ;;  %v1425_v45 = vld [vmem:[#allocation4 + $0x50] ss:$8 sps:$4 sm:$0xff]   ;;  %v1429_v46 = vld [vmem:[#allocation4 + $0x64] ss:$8 sps:$4 sm:$0xff]   ;;  %v112_v1 = vcombine.low %v1676_v31, %v109_v32 }
  0x47   :  { %815 = vmatpush1.bf16.msra.mxu0 %v1358_v7  ;;  %772 = vmatpush1.bf16.msra.mxu1 %v1403_v27  ;;  %v1380_v47 = vld [vmem:[#allocation4 + $0x1b4] ss:$8 sps:$4 sm:$0xff]   ;;  %v1382_v48 = vld [vmem:[#allocation4 + $0x1b0] ss:$8 sps:$4 sm:$0xff]   ;;  %v1431_v49 = vld [vmem:[#allocation4 + $0x60] ss:$8 sps:$4 sm:$0xff]  }
  0x48   :  { %816 = vmatprep.subr.bf16.mxu0 %v1359_v8  ;;  %773 = vmatprep.subr.bf16.mxu1 %v1411_v33  ;;  %v159_v40 = vpack.c.bf16 %v113_v36, %v113_v36  ;;  %v1435_v50 = vld [vmem:[#allocation4 + $0x74] ss:$8 sps:$4 sm:$0xff]   ;;  %v1383_v51 = vld [vmem:[#allocation4 + $0x1c4] ss:$8 sps:$4 sm:$0xff]   ;;  %v1385_v52 = vld [vmem:[#allocation4 + $0x1c0] ss:$8 sps:$4 sm:$0xff]   ;;  %v158_v6 = vpack.c.bf16 %v112_v1, %v112_v1 }
  0x49   :  { %v1437_v53 = vld [vmem:[#allocation4 + $0x70] ss:$8 sps:$4 sm:$0xff]   ;;  %v1441_v54 = vld [vmem:[#allocation4 + $0x84] ss:$8 sps:$4 sm:$0xff]   ;;  %v1386_v55 = vld [vmem:[#allocation4 + $0x1d4] ss:$8 sps:$4 sm:$0xff]  }
  0x4a   :  { %840 = vmatprep.mubr.bf16.mxu0 %v159_v40  ;;  %v1388_v56 = vld [vmem:[#allocation4 + $0x1d0] ss:$8 sps:$4 sm:$0xff]   ;;  %v1443_v57 = vld [vmem:[#allocation4 + $0x80] ss:$8 sps:$4 sm:$0xff]   ;;  %v1447_v58 = vld [vmem:[#allocation4 + $0x94] ss:$8 sps:$4 sm:$0xff]  }
  0x4b   :  { %817 = vmatpush1.bf16.msra.mxu0 %v1361_v9  ;;  %774 = vmatpush1.bf16.msra.mxu1 %v1413_v34  ;;  %v1392_v59 = vld [vmem:[#allocation4 + $0x1e4] ss:$8 sps:$4 sm:$0xff]   ;;  %v1394_v60 = vld [vmem:[#allocation4 + $0x1e0] ss:$8 sps:$4 sm:$0xff]   ;;  %v1449_v61 = vld [vmem:[#allocation4 + $0x90] ss:$8 sps:$4 sm:$0xff]  }
  0x4c   :  { %818 = vmatprep.subr.bf16.mxu0 %v1362_v10  ;;  %775 = vmatprep.subr.bf16.mxu1 %v1417_v38  ;;  %v1453_v62 = vld [vmem:[#allocation4 + $0xa4] ss:$8 sps:$4 sm:$0xff]   ;;  %v1398_v63 = vld [vmem:[#allocation4 + $0x1f4] ss:$8 sps:$4 sm:$0xff]   ;;  %v1400_v0 = vld [vmem:[#allocation4 + $0x1f0] ss:$8 sps:$4 sm:$0xff]  }
  0x4d   :  { %v1455_v2 = vld [vmem:[#allocation4 + $0xa0] ss:$8 sps:$4 sm:$0xff]   ;;  %v1459_v3 = vld [vmem:[#allocation4 + $0xb4] ss:$8 sps:$4 sm:$0xff]   ;;  %v1410_v4 = vld [vmem:[#allocation4 + $0x204] ss:$8 sps:$4 sm:$0xff]  }
  0x4e   :  { %v1408_v5 = vld [vmem:[#allocation4 + $0x200] ss:$8 sps:$4 sm:$0xff]   ;;  %v1461_v7 = vld [vmem:[#allocation4 + $0xb0] ss:$8 sps:$4 sm:$0xff]   ;;  %v1465_v8 = vld [vmem:[#allocation4 + $0xc4] ss:$8 sps:$4 sm:$0xff]  }
  0x4f   :  { %819 = vmatpush1.bf16.msra.mxu0 %v1364_v14  ;;  %776 = vmatpush1.bf16.msra.mxu1 %v1419_v41  ;;  %v1489_v9 = vld [vmem:[#allocation2] ss:$14 sps:$4 sm:$0xff]   ;;  %v1490_v10 = vld [vmem:[#allocation2 + $0x1c] ss:$14 sps:$4 sm:$0xff]  }
  0x50   :  { %820 = vmatprep.subr.bf16.mxu0 %v1365_v17  ;;  %777 = vmatprep.subr.bf16.mxu1 %v1423_v42  ;;  %v1416_v11 = vld [vmem:[#allocation4 + $0x214] ss:$8 sps:$4 sm:$0xff]   ;;  %v88_v12 = vrot.slane %v1489_v9, %v1673_v25  ;;  %v102_v13 = vrot.slane %v1490_v10, %v1673_v25  ;;  %v1414_v14 = vld [vmem:[#allocation4 + $0x210] ss:$8 sps:$4 sm:$0xff]   ;;  %v1467_v15 = vld [vmem:[#allocation4 + $0xc0] ss:$8 sps:$4 sm:$0xff]  }
  0x51   :  { %v1422_v16 = vld [vmem:[#allocation4 + $0x224] ss:$8 sps:$4 sm:$0xff]   ;;  %v1471_v17 = vld [vmem:[#allocation4 + $0xd4] ss:$8 sps:$4 sm:$0xff]   ;;  %v1473_v24 = vld [vmem:[#allocation4 + $0xd0] ss:$8 sps:$4 sm:$0xff]  }
  0x52   :  { %v111_v18 = vcombine.high %v88_v12, %v102_v13  ;;  %v1500_v21 = vld [vmem:[#allocation2 + $0x8] ss:$14 sps:$4 sm:$0xff]   ;;  %v1434_v32 = vld [vmem:[#allocation4 + $0x244] ss:$8 sps:$4 sm:$0xff]   ;;  %v110_v40 = vcombine.low %v88_v12, %v102_v13 }
  0x53   :  { %821 = vmatpush1.bf16.msra.mxu0 %v1367_v22  ;;  %778 = vmatpush1.bf16.msra.mxu1 %v1425_v45  ;;  %v1503_v22 = vld [vmem:[#allocation2 + $0x24] ss:$14 sps:$4 sm:$0xff]   ;;  %v1684_v27 = vrot.slane %v1500_v21, %v1673_v25  ;;  %v1479_v33 = vld [vmem:[#allocation4 + $0xe0] ss:$8 sps:$4 sm:$0xff]  }
  0x54   :  { %822 = vmatprep.subr.bf16.mxu0 %v1368_v23  ;;  %779 = vmatprep.subr.bf16.mxu1 %v1429_v46  ;;  %v157_v20 = vpack.c.bf16 %v111_v18, %v111_v18  ;;  %v1420_v23 = vld [vmem:[#allocation4 + $0x220] ss:$8 sps:$4 sm:$0xff]   ;;  %v1687_v28 = vrot.slane %v1503_v22, %v1673_v25  ;;  %v1428_v29 = vld [vmem:[#allocation4 + $0x234] ss:$8 sps:$4 sm:$0xff]   ;;  %v1485_v38 = vld [vmem:[#allocation4 + $0xf0] ss:$8 sps:$4 sm:$0xff]   ;;  %v156_v45 = vpack.c.bf16 %v110_v40, %v110_v40 }
  0x55   :  { %v1483_v34 = vld [vmem:[#allocation4 + $0xf4] ss:$8 sps:$4 sm:$0xff]   ;;  %v1496_v41 = vld [vmem:[#allocation4 + $0x304] ss:$8 sps:$4 sm:$0xff]   ;;  %v1468_v1 = vld [vmem:[#allocation4 + $0x2a0] ss:$8 sps:$4 sm:$0xff]  }
  0x56   :  { %799 = vmatprep.mubr.bf16.mxu1 %v157_v20  ;;  %v147_v31 = vcombine.high %v1684_v27, %v1687_v28  ;;  %v1505_v36 = vld [vmem:[#allocation2 + $0x28] ss:$14 sps:$4 sm:$0x33]   ;;  %v1491_v9 = vld [vmem:[#allocation4 + $0x2e0] ss:$8 sps:$4 sm:$0xff]  }
  0x57   :  { %823 = vmatpush1.bf16.msra.mxu0 %v1370_v26  ;;  %780 = vmatpush1.bf16.msra.mxu1 %v1431_v49  ;;  %v1477_v26 = vld [vmem:[#allocation4 + $0xe4] ss:$8 sps:$4 sm:$0xff]   ;;  %v1440_v42 = vld [vmem:[#allocation4 + $0x254] ss:$8 sps:$4 sm:$0xff]   ;;  %v1497_v12 = vld [vmem:[#allocation4 + $0x2f0] ss:$8 sps:$4 sm:$0xff]  }
  0x58   :  { %824 = vmatprep.subr.bf16.mxu0 %v1371_v30  ;;  %781 = vmatprep.subr.bf16.mxu1 %v1435_v50  ;;  %v1426_v30 = vld [vmem:[#allocation4 + $0x230] ss:$8 sps:$4 sm:$0xff]   ;;  %v1446_v49 = vld [vmem:[#allocation4 + $0x264] ss:$8 sps:$4 sm:$0xff]   ;;  %v1499_v10 = vld [vmem:[#allocation4 + $0x2f4] ss:$8 sps:$4 sm:$0xff]  }
  0x59   :  { %v1516_v18 = vld [vmem:[#allocation6 + $0x68] sm:$0xff]   ;;  %v1518_v21 = vld [vmem:[#allocation6 + $0x70] sm:$0xff]  }
  0x5a   :  { %v1517_v20 = vld [vmem:[#allocation6 + $0x28] sm:$0xff]   ;;  %v1519_v22 = vld [vmem:[#allocation6 + $0x30] sm:$0xff]  }
  0x5b   :  { %825 = vmatpush1.bf16.msra.mxu0 %v1373_v35  ;;  %782 = vmatpush1.bf16.msra.mxu1 %v1437_v53  ;;  %v1502_v35 = vld [vmem:[#allocation2 + $0xc] ss:$14 sps:$4 sm:$0x33]  }
  0x5c   :  { %826 = vmatprep.subr.bf16.mxu0 %v1374_v37  ;;  %783 = vmatprep.subr.bf16.mxu1 %v1441_v54  ;;  %v161_v37 = vpack.c.bf16 %v147_v31, %v147_v31  ;;  %v131_v46 = vrot.slane %v1502_v35, %v1673_v25  ;;  %v1452_v53 = vld [vmem:[#allocation4 + $0x274] ss:$8 sps:$4 sm:$0xff]   ;;  %v261_v35 = vld [vmem:[%s1709_s2] sm:$0x3] }
  0x5f   :  { %827 = vmatpush1.bf16.msra.mxu0 %v1376_v39  ;;  %784 = vmatpush1.bf16.msra.mxu1 %v1443_v57  ;;  %v1432_v39 = vld [vmem:[#allocation4 + $0x240] ss:$8 sps:$4 sm:$0xff]   ;;  %v1458_v57 = vld [vmem:[#allocation4 + $0x284] ss:$8 sps:$4 sm:$0xff]  }
  0x60   :  { %828 = vmatprep.subr.bf16.mxu0 %v1377_v43  ;;  %785 = vmatprep.subr.bf16.mxu1 %v1447_v58  ;;  %v1494_v43 = vld [vmem:[#allocation4 + $0x300] ss:$8 sps:$4 sm:$0xff]   ;;  %v1509_v58 = vld [vmem:[#allocation6 + $0x8] sm:$0xff]  }
  0x63   :  { %829 = vmatpush1.bf16.msra.mxu0 %v1379_v44  ;;  %786 = vmatpush1.bf16.msra.mxu1 %v1449_v61  ;;  %v1438_v44 = vld [vmem:[#allocation4 + $0x250] ss:$8 sps:$4 sm:$0xff]   ;;  %v1464_v61 = vld [vmem:[#allocation4 + $0x294] ss:$8 sps:$4 sm:$0xff]  }
  0x64   :  { %830 = vmatprep.subr.bf16.mxu0 %v1380_v47  ;;  %787 = vmatprep.subr.bf16.mxu1 %v1453_v62  ;;  %v145_v47 = vrot.slane %v1505_v36, %v1673_v25  ;;  %v1450_v25 = vld [vmem:[#allocation4 + $0x270] ss:$8 sps:$4 sm:$0xff]   ;;  %v1511_v62 = vld [vmem:[#allocation6 + $0x10] sm:$0xff]   ;;  %v269_v36 = vsub.s32 1, %v1670_v19 }
  0x66   :  { %v148_v50 = vcombine.low %v131_v46, %v145_v47 }
  0x67   :  { %831 = vmatpush1.bf16.msra.mxu0 %v1382_v48  ;;  %788 = vmatpush1.bf16.msra.mxu1 %v1455_v2  ;;  %v1506_v48 = vld [vmem:[#allocation6 + $0x40] sm:$0xff]  }
  0x68   :  { %832 = vmatprep.subr.bf16.mxu0 %v1383_v51  ;;  %789 = vmatprep.subr.bf16.mxu1 %v1459_v3  ;;  %v1602_v51 = vmov 0   ;;  %v162_v54 = vpack.c.bf16 %v148_v50, %v148_v50  ;;  %v1476_v2 = vld [vmem:[#allocation4 + $0x2b4] ss:$8 sps:$4 sm:$0xff]   ;;  %v1474_v3 = vld [vmem:[#allocation4 + $0x2b0] ss:$8 sps:$4 sm:$0xff]  }
  0x6b   :  { %833 = vmatpush1.bf16.msra.mxu0 %v1385_v52  ;;  %790 = vmatpush1.bf16.msra.mxu1 %v1461_v7  ;;  %v1444_v52 = vld [vmem:[#allocation4 + $0x260] ss:$8 sps:$4 sm:$0xff]   ;;  %v1486_v7 = vld [vmem:[#allocation4 + $0x2d0] ss:$8 sps:$4 sm:$0xff]  }
  0x6c   :  { %834 = vmatprep.subr.bf16.mxu0 %v1386_v55  ;;  %791 = vmatprep.subr.bf16.mxu1 %v1465_v8  ;;  %v1507_v55 = vld [vmem:[#allocation6] sm:$0xff]   ;;  %v1493_v8 = vld [vmem:[#allocation4 + $0x2e4] ss:$8 sps:$4 sm:$0xff]  }
  0x6f   :  { %835 = vmatpush1.bf16.msra.mxu0 %v1388_v56  ;;  %792 = vmatpush1.bf16.msra.mxu1 %v1467_v15  ;;  %v1508_v56 = vld [vmem:[#allocation6 + $0x48] sm:$0xff]   ;;  %v1513_v15 = vld [vmem:[#allocation6 + $0x18] sm:$0xff]  }
  0x70   :  { %836 = vmatprep.subr.bf16.mxu0 %v1392_v59  ;;  %793 = vmatprep.subr.bf16.mxu1 %v1471_v17  ;;  %v1456_v59 = vld [vmem:[#allocation4 + $0x280] ss:$8 sps:$4 sm:$0xff]   ;;  %v1515_v17 = vld [vmem:[#allocation6 + $0x20] sm:$0xff]  }
  0x73   :  { %837 = vmatpush1.bf16.msra.mxu0 %v1394_v60  ;;  %794 = vmatpush1.bf16.msra.mxu1 %v1473_v24  ;;  %v1510_v60 = vld [vmem:[#allocation6 + $0x50] sm:$0xff]   ;;  %v1521_v24 = vld [vmem:[#allocation6 + $0x38] sm:$0xff]  }
  0x74   :  { %838 = vmatprep.subr.bf16.mxu0 %v1398_v63  ;;  %795 = vmatprep.subr.bf16.mxu1 %v1477_v26  ;;  %v1462_v63 = vld [vmem:[#allocation4 + $0x290] ss:$8 sps:$4 sm:$0xff]  }
  0x77   :  { %839 = vmatpush1.bf16.msra.mxu0 %v1400_v0  ;;  %796 = vmatpush1.bf16.msra.mxu1 %v1479_v33  ;;  %v1470_v0 = vld [vmem:[#allocation4 + $0x2a4] ss:$8 sps:$4 sm:$0xff]  }
  0x78   :  { %849 = vmatprep.subr.bf16.mxu0 %v1410_v4  ;;  %797 = vmatprep.subr.bf16.mxu1 %v1483_v34  ;;  %v1482_v4 = vld [vmem:[#allocation4 + $0x2c4] ss:$8 sps:$4 sm:$0xff]   ;;  %v265_v34 = vsub.s32 0, %v1670_v19 }
  0x7a   :  { %841 = vmatmul.mubr.bf16.vlgmr.msra.gmra.mrb[0].mxu0 %v158_v6  ;;  %v1488_v6 = vld [vmem:[#allocation4 + $0x2d4] ss:$8 sps:$4 sm:$0xff]  }
  0x7b   :  { %850 = vmatpush1.bf16.msra.mxu0 %v1408_v5  ;;  %881 = vmatprep.mubr.bf16.mxu0 %v161_v37  ;;  %v1480_v5 = vld [vmem:[#allocation4 + $0x2c0] ss:$8 sps:$4 sm:$0xff]   ;;  %v266_v37 = vrot.slane %v261_v35, %v265_v34 }
  0x7c   :  { %851 = vmatprep.subr.bf16.mxu0 %v1416_v11  ;;  %798 = vmatpush1.bf16.msra.mxu1 %v1485_v38  ;;  %v146_v11 = vcombine.low %v1684_v27, %v1687_v28  ;;  %v270_v38 = vrot.slane %v261_v35, %v269_v36 }
  0x7d   :  { %890 = vmatprep.subr.bf16.mxu1 %v1496_v41 }
  0x7e   :  { %v160_v13 = vpack.c.bf16 %v146_v11, %v146_v11 }
  0x7f   :  { %852 = vmatpush1.bf16.msra.mxu0 %v1414_v14  ;;  %800 = vmatmul.mubr.bf16.vlgmr.msra.gmra.mrb[0].mxu1 %v156_v45  ;;  %v1512_v14 = vld [vmem:[#allocation6 + $0x58] sm:$0xff]  }
  0x80   :  { %853 = vmatprep.subr.bf16.mxu0 %v1422_v16  ;;  %891 = vmatpush1.bf16.msra.mxu1 %v1494_v43  ;;  %v1514_v16 = vld [vmem:[#allocation6 + $0x60] sm:$0xff]  }
  0x81   :  { %922 = vmatprep.mubr.bf16.mxu1 %v1602_v51  ;;  %1303 = vmatprep.subr.bf16.mxu1 %v1506_v48 }
  0x83   :  { %854 = vmatpush1.bf16.msra.mxu0 %v1420_v23  ;;  %v1520_v23 = vld [vmem:[#allocation6 + $0x78] sm:$0xff]  }
  0x84   :  { %855 = vmatprep.subr.bf16.mxu0 %v1428_v29 }
  0x87   :  { %856 = vmatpush1.bf16.msra.mxu0 %v1426_v30  ;;  %1283 = vmatmul.mubr.msk.bf16.vlgmr.msra.gmra.mrb[4].mxu1 %vm763_vm0, %v162_v54 }
  0x88   :  { %857 = vmatprep.subr.bf16.mxu0 %v1434_v32  ;;  %1304 = vmatpush3.bf16.msra.mxu1 %v1507_v55 }
  0x89   :  { %1305 = vmatprep.subr.bf16.mxu1 %v1508_v56  ;;  %v1284_v56 = vld [vmem:[%s1711_s4] ss:$0 sm:$0xff] }
  0x8b   :  { %858 = vmatpush1.bf16.msra.mxu0 %v1432_v39 }
  0x8c   :  { %859 = vmatprep.subr.bf16.mxu0 %v1440_v42  ;;  %1306 = vmatpush3.bf16.msra.mxu1 %v1509_v58 }
  0x8d   :  { %1307 = vmatprep.subr.bf16.mxu1 %v1510_v60 }
  0x8f   :  { %860 = vmatpush1.bf16.msra.mxu0 %v1438_v44 }
  0x90   :  { %861 = vmatprep.subr.bf16.mxu0 %v1446_v49  ;;  %1308 = vmatpush3.bf16.msra.mxu1 %v1511_v62 }
  0x91   :  { %1309 = vmatprep.subr.bf16.mxu1 %v1512_v14 }
  0x93   :  { %862 = vmatpush1.bf16.msra.mxu0 %v1444_v52 }
  0x94   :  { %863 = vmatprep.subr.bf16.mxu0 %v1452_v53  ;;  %1310 = vmatpush3.bf16.msra.mxu1 %v1513_v15  ;;  %v1603_v53 = vmov 1966171168  }
  0x95   :  { %1311 = vmatprep.subr.bf16.mxu1 %v1514_v16  ;;  %v1113_v54 = vunpack.c.l.s4 %v1603_v53 }
  0x97   :  { %864 = vmatpush1.bf16.msra.mxu0 %v1450_v25  ;;  %v1114_v25 = vunpack.c.0.s8 %v1113_v54 }
  0x98   :  { %865 = vmatprep.subr.bf16.mxu0 %v1458_v57  ;;  %1312 = vmatpush3.bf16.msra.mxu1 %v1515_v17 }
  0x99   :  { %1313 = vmatprep.subr.bf16.mxu1 %v1516_v18  ;;  %v1117_v62 = vsub.s32 %v1114_v25, %v1670_v19 }
  0x9b   :  { %866 = vmatpush1.bf16.msra.mxu0 %v1456_v59 }
  0x9c   :  { %867 = vmatprep.subr.bf16.mxu0 %v1464_v61  ;;  %1314 = vmatpush3.bf16.msra.mxu1 %v1517_v20 }
  0x9d   :  { %1315 = vmatprep.subr.bf16.mxu1 %v1518_v21 }
  0x9f   :  { %868 = vmatpush1.bf16.msra.mxu0 %v1462_v63 }
  0xa0   :  { %869 = vmatprep.subr.bf16.mxu0 %v1470_v0  ;;  %1316 = vmatpush3.bf16.msra.mxu1 %v1519_v22 }
  0xa1   :  { %1317 = vmatprep.subr.bf16.mxu1 %v1520_v23 }
  0xa3   :  { %870 = vmatpush1.bf16.msra.mxu0 %v1468_v1 }
  0xa4   :  { %871 = vmatprep.subr.bf16.mxu0 %v1476_v2  ;;  %1318 = vmatpush3.bf16.msra.mxu1 %v1521_v24 }
  0xa7   :  { %872 = vmatpush1.bf16.msra.mxu0 %v1474_v3 }
  0xa8   :  { %873 = vmatprep.subr.bf16.mxu0 %v1482_v4 }
  0xab   :  { %874 = vmatpush1.bf16.msra.mxu0 %v1480_v5 }
  0xac   :  { %875 = vmatprep.subr.bf16.mxu0 %v1488_v6 }
  0xaf   :  { %876 = vmatpush1.bf16.msra.mxu0 %v1486_v7 }
  0xb0   :  { %877 = vmatprep.subr.bf16.mxu0 %v1493_v8 }
  0xb3   :  { %878 = vmatpush1.bf16.msra.mxu0 %v1491_v9 }
  0xb4   :  { %879 = vmatprep.subr.bf16.mxu0 %v1499_v10 }
  0xb7   :  { %880 = vmatpush1.bf16.msra.mxu0 %v1497_v12 }
  0xba   :  { %882 = vmatmul.mubr.bf16.vlgmr.msra.gmra.mrb[0].mxu0 %v160_v13 }
 0x152   :  { %v801_v26 = vpop.f32.mrb[0].mxu1 }
 0x153   :  { %v803_v27 = vpop.f32.mrb[1].mxu1  ;;  %v802_v39 = vadd.f32 %v801_v26, %v266_v37 }
 0x154   :  { %v805_v28 = vpop.f32.mrb[2].mxu1  ;;  %v804_v40 = vadd.f32 %v803_v27, %v270_v38 }
 0x155   :  { %v806_v29 = vpop.f32.mrb[3].mxu1 }
 0x15a   :  { %v924_v30 = vpop.f32.mrb[4].mxu1 }
 0x15b   :  { %v926_v31 = vpop.f32.mrb[5].mxu1 }
 0x15c   :  { %v928_v32 = vpop.f32.mrb[6].mxu1 }
 0x15d   :  { %v929_v33 = vpop.f32.mrb[7].mxu1 }
 0x18d   :  { %v883_v41 = vpop.f32.mrb[0].mxu0 }
 0x18e   :  { %v1326_v42 = vadd.f32 %v883_v41, %v802_v39  ;;  %v885_v43 = vpop.f32.mrb[1].mxu0 }
 0x18f   :  { %v1329_v44 = vadd.f32 %v885_v43, %v804_v40  ;;  %v887_v45 = vpop.f32.mrb[2].mxu0 }
 0x190   :  { %v1327_v46 = vadd.f32 %v1326_v42, %v924_v30  ;;  %v888_v47 = vpop.f32.mrb[3].mxu0 }
 0x191   :  { %v1330_v48 = vadd.f32 %v1329_v44, %v926_v31 }
 0x192   :  { %v931_v49 = vmax.f32 %v1327_v46, 0.0 }
 0x193   :  { %v932_v50 = vmax.f32 %v1330_v48, 0.0 }
 0x194   :  { %v933_v52 = vpack.c.bf16 %v931_v49, %v931_v49 }
 0x195   :  { %v934_v51 = vpack.c.bf16 %v932_v50, %v932_v50 }
 0x197   :  { %1102 = vmatprep.mubr.bf16.mxu1 %v934_v51 }
 0x198   :  { %1103 = vmatmul.mubr.bf16.vlgmr.msra.gmra.mrb[8].mxu1 %v933_v52 }
 0x26b   :  { %v1319_v55 = vpop.f32.mrb[8].mxu1 }
 0x26c   :  { %v1320_v57 = vpop.f32.mrb[9].mxu1 }
 0x26d   :  { %v1321_v58 = vadd.f32 %v1320_v57, %v1319_v55  ;;  %v1322_v59 = vpop.f32.mrb[10].mxu1 }
 0x26e   :  { %v1323_v60 = vpop.f32.mrb[11].mxu1 }
 0x26f   :  { %v1105_v61 = vadd.f32 %v1321_v58, %v1284_v56 }
 0x271   :  { %v1110_v63 = vpack.c.bf16 %v1105_v61, %v1105_v61 }
 0x273   :  { %v1118_v0 = vrot.slane %v1110_v63, %v1117_v62 }
 0x275   :  { %1301 = vst.sshfl [vmem:[#allocation7] sm:$0x1 pattern:$0x73625140] %v1118_v0 }
 0x27c   :  { %v1161_v1 = vld [vmem:[#allocation7] sm:$0x1] }
 0x27d   :  { %1162 = vst [vmem:[%s1712_s5] sm:$0x1] %v1161_v1 }
 0x27e   :  { %1179 = vsyncpa [#allocation3], 1 }
 0x27f   :  { %1180 = vsyncpa [#allocation5], 1 }

</bundles_post_ra>
